<compile_context>
chip_gen: v7x
topology: tpu7x:2x2x1
jax: 0.10.0
libtpu: 0.0.40
codegen_flags: <defaults>
</compile_context>

<pallas_src>
import functools

import jax
import jax.numpy as jnp
from jax.experimental import pallas as pl
from jax.experimental.pallas import tpu as pltpu

# Fixed module channel sizes: nn.Conv2d(2, 8, 3), nn.Conv2d(8, 16, 3).
CIN, C1, C2 = 2, 8, 16
BN_EPS = 1e-5


# --------------------------------------------------------------------------- #
# Wrapper-side weight repacking: banded (Toeplitz-block) conv matrices.
# --------------------------------------------------------------------------- #
def _banded_weight(w_hwio, in_block_cols, n_out_w):
    """B[kh, b*Cin+ci, w*Cout+co] = w[kh, col(b)-w+1, ci, co] (0 outside the band).

    A single matmul of a [rows=H, lanes=blocks*Cin] slab against B[kh] applies
    all kw taps of one kh row of the 3x3 kernel, including the zero padding
    along W (out-of-band taps are zero) and skipping dead lane blocks
    (col(b) < 0), which is how the stride-2 pooled layout is consumed.
    """
    kh, kw, cin, cout = w_hwio.shape
    cols = jnp.asarray(in_block_cols, jnp.int32)              # (Bi,)
    wout = jnp.arange(n_out_w, dtype=jnp.int32)               # (Wo,)
    tap = cols[:, None] - wout[None, :] + 1                   # (Bi, Wo)
    valid = (tap >= 0) & (tap < kw) & (cols[:, None] >= 0)
    g = w_hwio[:, jnp.clip(tap, 0, kw - 1), :, :]             # (kh, Bi, Wo, Cin, Cout)
    g = jnp.where(valid[None, :, :, None, None], g, 0.0)
    g = jnp.transpose(g, (0, 1, 3, 2, 4))                     # (kh, Bi, Cin, Wo, Cout)
    return g.reshape(kh, cols.shape[0] * cin, n_out_w * cout)


def init_params(key):
    k1, k2, k3, k4 = jax.random.split(key, 4)
    # PyTorch conv weight layout (Cout, Cin, kh, kw) -> HWIO (kh, kw, Cin, Cout).
    w1 = 0.1 * jax.random.normal(k1, (C1, CIN, 3, 3), jnp.float32)
    b1 = 0.1 * jax.random.normal(k2, (C1,), jnp.float32)
    w2 = 0.1 * jax.random.normal(k3, (C2, C1, 3, 3), jnp.float32)
    b2 = 0.1 * jax.random.normal(k4, (C2,), jnp.float32)
    return {
        "w1": jnp.transpose(w1, (2, 3, 1, 0)),
        "b1": b1,
        "w2": jnp.transpose(w2, (2, 3, 1, 0)),
        "b2": b2,
        "bn1_gamma": jnp.ones((CIN,), jnp.float32),   # BatchNorm2d default init
        "bn1_beta": jnp.zeros((CIN,), jnp.float32),
    }


def prepare_params(params, H, W):
    """One-time, data-independent repack of weights for the fused kernel."""
    W2 = W // 2
    cols1 = jnp.arange(W, dtype=jnp.int32)
    # Stage-2 input: pooled column q lives at lane block 2*q; odd blocks are dead.
    cols2 = jnp.asarray([b // 2 if b % 2 == 0 else -1 for b in range(W)], jnp.int32)
    return {
        "wb1": _banded_weight(params["w1"], cols1, W),    # (3, W*CIN, W*C1)
        "wb2": _banded_weight(params["w2"], cols2, W2),   # (3, W*C1,  W2*C2)
        "b1t": jnp.tile(params["b1"], W).reshape(1, W * C1),
        "b2t": jnp.tile(params["b2"], W2).reshape(1, W2 * C2),
        "gamma": params["bn1_gamma"],
        "beta": params["bn1_beta"],
    }


# --------------------------------------------------------------------------- #
# Fused Pallas kernel: BN -> conv1 -> ReLU -> pool -> conv2 -> ReLU -> pool -> sigmoid
# --------------------------------------------------------------------------- #
def _make_fused_kernel(H, W):
    H2, W2, H4 = H // 2, W // 2, H // 4

    def kernel(x_ref, scale_ref, shift_ref, wb1_ref, b1_ref, wb2_ref, b2_ref, o_ref):
        f32 = jnp.float32
        nl1 = W * C1          # conv1 output lanes  (lane = w*C1 + co) = 128
        nl2 = W2 * C2         # conv2 output lanes  (lane = w*C2 + co) = 128

        # BatchNorm affine (batch stats folded wrapper-side into scale/shift).
        xs = x_ref[...].astype(f32) * scale_ref[...] + shift_ref[...]   # (H, W*CIN)

        # conv1: three banded MXU matmuls (kh = -1, 0, +1); H padding = zero rows.
        zr = jnp.zeros((1, W * CIN), f32)
        up = jnp.concatenate([zr, xs[: H - 1, :]], axis=0)              # rows h-1
        dn = jnp.concatenate([xs[1:, :], zr], axis=0)                   # rows h+1
        c1 = jnp.dot(up, wb1_ref[0], preferred_element_type=f32)
        c1 = c1 + jnp.dot(xs, wb1_ref[1], preferred_element_type=f32)
        c1 = c1 + jnp.dot(dn, wb1_ref[2], preferred_element_type=f32)
        c1 = jnp.maximum(c1 + b1_ref[...], 0.0)                         # (H, 128) ReLU

        # 2x2 max-pool #1: rows via reshape + max of the two 128-lane halves,
        # cols via max with the neighbour channel block (C1 lanes to the right).
        r = c1.reshape(H2, 2 * nl1)
        r = jnp.maximum(r[:, :nl1], r[:, nl1:])                         # (H2, 128)
        s = jnp.maximum(
            r, jnp.concatenate([r[:, C1:], jnp.zeros((H2, C1), f32)], axis=1))
        # valid pooled data sits at lanes 2*w2*C1 + c; wb2 absorbs the gaps.

        # conv2: same banded-matmul structure.
        zr2 = jnp.zeros((1, nl1), f32)
        up2 = jnp.concatenate([zr2, s[: H2 - 1, :]], axis=0)
        dn2 = jnp.concatenate([s[1:, :], zr2], axis=0)
        c2 = jnp.dot(up2, wb2_ref[0], preferred_element_type=f32)
        c2 = c2 + jnp.dot(s, wb2_ref[1], preferred_element_type=f32)
        c2 = c2 + jnp.dot(dn2, wb2_ref[2], preferred_element_type=f32)
        c2 = jnp.maximum(c2 + b2_ref[...], 0.0)                         # (H2, 128) ReLU

        # 2x2 max-pool #2 + sigmoid; lane-dense (H4, 128) store
        # (valid output at lanes 2*w4*C2 + co, de-interleaved by the wrapper).
        r2 = c2.reshape(H4, 2 * nl2)
        r2 = jnp.maximum(r2[:, :nl2], r2[:, nl2:])                      # (H4, 128)
        p2 = jnp.maximum(
            r2, jnp.concatenate([r2[:, C2:], jnp.zeros((H4, C2), f32)], axis=1))
        o_ref[...] = jax.nn.sigmoid(p2).astype(o_ref.dtype)

    return kernel


def downsample_conv_forward(x_nchw, prep):
    N, cin, H, W = x_nchw.shape
    assert cin == CIN and H % 4 == 0 and W % 4 == 0
    x = x_nchw.astype(jnp.float32)

    # BatchNorm2d(2) training-mode stats (biased variance) -- tiny wrapper glue,
    # folded into one per-lane scale/shift FMA applied inside the kernel.
    mean = jnp.mean(x, axis=(0, 2, 3))
    var = jnp.var(x, axis=(0, 2, 3))
    scale = prep["gamma"] * jax.lax.rsqrt(var + BN_EPS)
    shift = prep["beta"] - mean * scale
    scale_t = jnp.tile(scale, W).reshape(1, W * CIN)
    shift_t = jnp.tile(shift, W).reshape(1, W * CIN)

    # NCHW -> per-image [rows = H, lanes = W*CIN] (channels-minor).
    x_k = jnp.transpose(x, (0, 2, 3, 1)).reshape(N, H, W * CIN)

    H4, W2, W4 = H // 4, W // 2, W // 4
    nl1, nl2 = W * C1, W2 * C2

    y = pl.pallas_call(
        _make_fused_kernel(H, W),
        out_shape=jax.ShapeDtypeStruct((N, H4, nl2), jnp.float32),
        grid=(N,),
        in_specs=[
            pl.BlockSpec((None, H, W * CIN), lambda n: (n, 0, 0)),   # x (per image)
            pl.BlockSpec((1, W * CIN), lambda n: (0, 0)),            # BN scale tile
            pl.BlockSpec((1, W * CIN), lambda n: (0, 0)),            # BN shift tile
            pl.BlockSpec((3, W * CIN, nl1), lambda n: (0, 0, 0)),    # banded W1
            pl.BlockSpec((1, nl1), lambda n: (0, 0)),                # bias1 tile
            pl.BlockSpec((3, nl1, nl2), lambda n: (0, 0, 0)),        # banded W2
            pl.BlockSpec((1, nl2), lambda n: (0, 0)),                # bias2 tile
        ],
        out_specs=pl.BlockSpec((None, H4, nl2), lambda n: (n, 0, 0)),
        compiler_params=pltpu.CompilerParams(dimension_semantics=("parallel",)),
    )(x_k, scale_t, shift_t, prep["wb1"], prep["b1t"], prep["wb2"], prep["b2t"])

    # (N, H/4, W2*C2): valid outputs at lanes 2*w4*C2 + co  ->  NCHW (N, C2, H/4, W/4).
    y = y.reshape(N, H4, W4, 2 * C2)[..., :C2]
    return jnp.transpose(y, (0, 3, 1, 2))


# --------------------------------------------------------------------------- #
# Pure-JAX reference (for a correctness cross-check only).
# --------------------------------------------------------------------------- #
def reference_forward(x_nchw, params):
    x = x_nchw.astype(jnp.float32)
    mean = jnp.mean(x, axis=(0, 2, 3), keepdims=True)
    var = jnp.var(x, axis=(0, 2, 3), keepdims=True)
    g = params["bn1_gamma"].reshape(1, -1, 1, 1)
    b = params["bn1_beta"].reshape(1, -1, 1, 1)
    y = (x - mean) * jax.lax.rsqrt(var + BN_EPS) * g + b

    def conv(t, w_hwio, bias):
        out = jax.lax.conv_general_dilated(
            t, w_hwio, window_strides=(1, 1), padding="SAME",
            dimension_numbers=("NCHW", "HWIO", "NCHW"))
        return out + bias.reshape(1, -1, 1, 1)

    def pool(t):
        return jax.lax.reduce_window(t, -jnp.inf, jax.lax.max,
                                     (1, 1, 2, 2), (1, 1, 2, 2), "VALID")

    z = pool(jax.nn.relu(conv(y, params["w1"], params["b1"])))
    z = pool(jax.nn.relu(conv(z, params["w2"], params["b2"])))
    return jax.nn.sigmoid(z)


if __name__ == "__main__":
    key = jax.random.PRNGKey(0)
    pkey, xkey = jax.random.split(key)
    params = init_params(pkey)

    N, H, W = 2, 16, 16                      # conv1 expects 2 input channels
    x = jax.random.normal(xkey, (N, CIN, H, W), jnp.float32)

    prep = prepare_params(params, H, W)      # one-time weight repack (outside jit)
    fwd = jax.jit(downsample_conv_forward)
    out = jax.block_until_ready(fwd(x, prep))

    assert out.shape == (N, C2, H // 4, W // 4), out.shape
    assert bool(jnp.all(jnp.isfinite(out)))
    assert bool(jnp.all((out >= 0.0) & (out <= 1.0)))    # sigmoid output range

    ref = jax.jit(reference_forward)(x, params)
    max_err = float(jnp.max(jnp.abs(out - ref)))
    assert bool(jnp.allclose(out, ref, atol=5e-3, rtol=0.0)), max_err

    print("KERNEL_OK")
</pallas_src>

<mosaic_0001>
module attributes {stable_mosaic.version = 11 : i64} {
  func.func @kernel(%arg0: i32, %arg1: memref<1x16x32xf32, #tpu.memory_space<vmem>>, %arg2: memref<1x32xf32, #tpu.memory_space<vmem>>, %arg3: memref<1x32xf32, #tpu.memory_space<vmem>>, %arg4: memref<3x32x128xf32, #tpu.memory_space<vmem>>, %arg5: memref<1x128xf32, #tpu.memory_space<vmem>>, %arg6: memref<3x128x128xf32, #tpu.memory_space<vmem>>, %arg7: memref<1x128xf32, #tpu.memory_space<vmem>>, %arg8: memref<1x4x128xf32, #tpu.memory_space<vmem>>) attributes {dimension_semantics = [#tpu.dimension_semantics<parallel>], iteration_bounds = array<i64: 2>, scalar_prefetch = 0 : i64, scratch_operands = 0 : i64, tpu.core_type = #tpu.core_type<tc>, window_params = [{transform_indices = @transform_0, window_bounds = array<i64: 1, 16, 32>}, {pipeline_mode = #tpu.pipeline_mode<synchronous>, transform_indices = @transform_1, window_bounds = array<i64: 1, 32>}, {pipeline_mode = #tpu.pipeline_mode<synchronous>, transform_indices = @transform_2, window_bounds = array<i64: 1, 32>}, {pipeline_mode = #tpu.pipeline_mode<synchronous>, transform_indices = @transform_3, window_bounds = array<i64: 3, 32, 128>}, {pipeline_mode = #tpu.pipeline_mode<synchronous>, transform_indices = @transform_4, window_bounds = array<i64: 1, 128>}, {pipeline_mode = #tpu.pipeline_mode<synchronous>, transform_indices = @transform_5, window_bounds = array<i64: 3, 128, 128>}, {pipeline_mode = #tpu.pipeline_mode<synchronous>, transform_indices = @transform_6, window_bounds = array<i64: 1, 128>}, {transform_indices = @transform_7, window_bounds = array<i64: 1, 4, 128>}]} {
    %c0 = arith.constant 0 : index
    %c0_0 = arith.constant 0 : index
    %c0_1 = arith.constant 0 : index
    %0 = vector.load %arg1[%c0, %c0_0, %c0_1] : memref<1x16x32xf32, #tpu.memory_space<vmem>>, vector<1x16x32xf32>
    %1 = vector.shape_cast %0 : vector<1x16x32xf32> to vector<16x32xf32>
    %c0_2 = arith.constant 0 : index
    %c0_3 = arith.constant 0 : index
    %2 = vector.load %arg2[%c0_2, %c0_3] : memref<1x32xf32, #tpu.memory_space<vmem>>, vector<1x32xf32>
    %3 = vector.broadcast %2 : vector<1x32xf32> to vector<16x32xf32>
    %4 = arith.mulf %1, %3 : vector<16x32xf32>
    %c0_4 = arith.constant 0 : index
    %c0_5 = arith.constant 0 : index
    %5 = vector.load %arg3[%c0_4, %c0_5] : memref<1x32xf32, #tpu.memory_space<vmem>>, vector<1x32xf32>
    %6 = vector.broadcast %5 : vector<1x32xf32> to vector<16x32xf32>
    %7 = arith.addf %4, %6 : vector<16x32xf32>
    %cst = arith.constant 0.000000e+00 : f32
    %8 = vector.broadcast %cst : f32 to vector<1x32xf32>
    %9 = vector.extract_strided_slice %7 {offsets = [0, 0], sizes = [15, 32], strides = [1, 1]} : vector<16x32xf32> to vector<15x32xf32>
    %10 = tpu.concatenate %8, %9 in 0 : vector<1x32xf32>, vector<15x32xf32> -> vector<16x32xf32>
    %11 = vector.extract_strided_slice %7 {offsets = [1, 0], sizes = [15, 32], strides = [1, 1]} : vector<16x32xf32> to vector<15x32xf32>
    %12 = tpu.concatenate %11, %8 in 0 : vector<15x32xf32>, vector<1x32xf32> -> vector<16x32xf32>
    %c0_6 = arith.constant 0 : index
    %c0_7 = arith.constant 0 : index
    %c0_8 = arith.constant 0 : index
    %13 = vector.load %arg4[%c0_6, %c0_7, %c0_8] : memref<3x32x128xf32, #tpu.memory_space<vmem>>, vector<1x32x128xf32>
    %14 = vector.shape_cast %13 : vector<1x32x128xf32> to vector<32x128xf32>
    %cst_9 = arith.constant dense<0.000000e+00> : vector<16x128xf32>
    %15 = tpu.matmul %10, %14, %cst_9 {dimension_numbers = #tpu.dot_dimension_numbers<[1], [0], [0], [1], [0, 0, 1, 1], [], []>} : vector<16x32xf32>, vector<32x128xf32>, vector<16x128xf32> -> vector<16x128xf32>
    %c1 = arith.constant 1 : index
    %c0_10 = arith.constant 0 : index
    %c0_11 = arith.constant 0 : index
    %16 = vector.load %arg4[%c1, %c0_10, %c0_11] : memref<3x32x128xf32, #tpu.memory_space<vmem>>, vector<1x32x128xf32>
    %17 = vector.shape_cast %16 : vector<1x32x128xf32> to vector<32x128xf32>
    %cst_12 = arith.constant dense<0.000000e+00> : vector<16x128xf32>
    %18 = tpu.matmul %7, %17, %cst_12 {dimension_numbers = #tpu.dot_dimension_numbers<[1], [0], [0], [1], [0, 0, 1, 1], [], []>} : vector<16x32xf32>, vector<32x128xf32>, vector<16x128xf32> -> vector<16x128xf32>
    %19 = arith.addf %15, %18 : vector<16x128xf32>
    %c2 = arith.constant 2 : index
    %c0_13 = arith.constant 0 : index
    %c0_14 = arith.constant 0 : index
    %20 = vector.load %arg4[%c2, %c0_13, %c0_14] : memref<3x32x128xf32, #tpu.memory_space<vmem>>, vector<1x32x128xf32>
    %21 = vector.shape_cast %20 : vector<1x32x128xf32> to vector<32x128xf32>
    %cst_15 = arith.constant dense<0.000000e+00> : vector<16x128xf32>
    %22 = tpu.matmul %12, %21, %cst_15 {dimension_numbers = #tpu.dot_dimension_numbers<[1], [0], [0], [1], [0, 0, 1, 1], [], []>} : vector<16x32xf32>, vector<32x128xf32>, vector<16x128xf32> -> vector<16x128xf32>
    %23 = arith.addf %19, %22 : vector<16x128xf32>
    %c0_16 = arith.constant 0 : index
    %c0_17 = arith.constant 0 : index
    %24 = vector.load %arg5[%c0_16, %c0_17] : memref<1x128xf32, #tpu.memory_space<vmem>>, vector<1x128xf32>
    %25 = vector.broadcast %24 : vector<1x128xf32> to vector<16x128xf32>
    %26 = arith.addf %23, %25 : vector<16x128xf32>
    %cst_18 = arith.constant 0.000000e+00 : f32
    %27 = vector.broadcast %cst_18 : f32 to vector<16x128xf32>
    %28 = arith.maximumf %26, %27 : vector<16x128xf32>
    %29 = vector.shape_cast %28 : vector<16x128xf32> to vector<8x256xf32>
    %30 = vector.extract_strided_slice %29 {offsets = [0, 0], sizes = [8, 128], strides = [1, 1]} : vector<8x256xf32> to vector<8x128xf32>
    %31 = vector.extract_strided_slice %29 {offsets = [0, 128], sizes = [8, 128], strides = [1, 1]} : vector<8x256xf32> to vector<8x128xf32>
    %32 = arith.maximumf %30, %31 : vector<8x128xf32>
    %33 = vector.extract_strided_slice %32 {offsets = [0, 8], sizes = [8, 120], strides = [1, 1]} : vector<8x128xf32> to vector<8x120xf32>
    %cst_19 = arith.constant 0.000000e+00 : f32
    %34 = vector.broadcast %cst_19 : f32 to vector<8x8xf32>
    %35 = tpu.concatenate %33, %34 in 1 : vector<8x120xf32>, vector<8x8xf32> -> vector<8x128xf32>
    %36 = arith.maximumf %32, %35 : vector<8x128xf32>
    %cst_20 = arith.constant 0.000000e+00 : f32
    %37 = vector.broadcast %cst_20 : f32 to vector<1x128xf32>
    %38 = vector.extract_strided_slice %36 {offsets = [0, 0], sizes = [7, 128], strides = [1, 1]} : vector<8x128xf32> to vector<7x128xf32>
    %39 = tpu.concatenate %37, %38 in 0 : vector<1x128xf32>, vector<7x128xf32> -> vector<8x128xf32>
    %40 = vector.extract_strided_slice %36 {offsets = [1, 0], sizes = [7, 128], strides = [1, 1]} : vector<8x128xf32> to vector<7x128xf32>
    %41 = tpu.concatenate %40, %37 in 0 : vector<7x128xf32>, vector<1x128xf32> -> vector<8x128xf32>
    %c0_21 = arith.constant 0 : index
    %c0_22 = arith.constant 0 : index
    %c0_23 = arith.constant 0 : index
    %42 = vector.load %arg6[%c0_21, %c0_22, %c0_23] : memref<3x128x128xf32, #tpu.memory_space<vmem>>, vector<1x128x128xf32>
    %43 = vector.shape_cast %42 : vector<1x128x128xf32> to vector<128x128xf32>
    %cst_24 = arith.constant dense<0.000000e+00> : vector<8x128xf32>
    %44 = tpu.matmul %39, %43, %cst_24 {dimension_numbers = #tpu.dot_dimension_numbers<[1], [0], [0], [1], [0, 0, 1, 1], [], []>} : vector<8x128xf32>, vector<128x128xf32>, vector<8x128xf32> -> vector<8x128xf32>
    %c1_25 = arith.constant 1 : index
    %c0_26 = arith.constant 0 : index
    %c0_27 = arith.constant 0 : index
    %45 = vector.load %arg6[%c1_25, %c0_26, %c0_27] : memref<3x128x128xf32, #tpu.memory_space<vmem>>, vector<1x128x128xf32>
    %46 = vector.shape_cast %45 : vector<1x128x128xf32> to vector<128x128xf32>
    %cst_28 = arith.constant dense<0.000000e+00> : vector<8x128xf32>
    %47 = tpu.matmul %36, %46, %cst_28 {dimension_numbers = #tpu.dot_dimension_numbers<[1], [0], [0], [1], [0, 0, 1, 1], [], []>} : vector<8x128xf32>, vector<128x128xf32>, vector<8x128xf32> -> vector<8x128xf32>
    %48 = arith.addf %44, %47 : vector<8x128xf32>
    %c2_29 = arith.constant 2 : index
    %c0_30 = arith.constant 0 : index
    %c0_31 = arith.constant 0 : index
    %49 = vector.load %arg6[%c2_29, %c0_30, %c0_31] : memref<3x128x128xf32, #tpu.memory_space<vmem>>, vector<1x128x128xf32>
    %50 = vector.shape_cast %49 : vector<1x128x128xf32> to vector<128x128xf32>
    %cst_32 = arith.constant dense<0.000000e+00> : vector<8x128xf32>
    %51 = tpu.matmul %41, %50, %cst_32 {dimension_numbers = #tpu.dot_dimension_numbers<[1], [0], [0], [1], [0, 0, 1, 1], [], []>} : vector<8x128xf32>, vector<128x128xf32>, vector<8x128xf32> -> vector<8x128xf32>
    %52 = arith.addf %48, %51 : vector<8x128xf32>
    %c0_33 = arith.constant 0 : index
    %c0_34 = arith.constant 0 : index
    %53 = vector.load %arg7[%c0_33, %c0_34] : memref<1x128xf32, #tpu.memory_space<vmem>>, vector<1x128xf32>
    %54 = vector.broadcast %53 : vector<1x128xf32> to vector<8x128xf32>
    %55 = arith.addf %52, %54 : vector<8x128xf32>
    %cst_35 = arith.constant 0.000000e+00 : f32
    %56 = vector.broadcast %cst_35 : f32 to vector<8x128xf32>
    %57 = arith.maximumf %55, %56 : vector<8x128xf32>
    %58 = vector.shape_cast %57 : vector<8x128xf32> to vector<4x256xf32>
    %59 = vector.extract_strided_slice %58 {offsets = [0, 0], sizes = [4, 128], strides = [1, 1]} : vector<4x256xf32> to vector<4x128xf32>
    %60 = vector.extract_strided_slice %58 {offsets = [0, 128], sizes = [4, 128], strides = [1, 1]} : vector<4x256xf32> to vector<4x128xf32>
    %61 = arith.maximumf %59, %60 : vector<4x128xf32>
    %62 = vector.extract_strided_slice %61 {offsets = [0, 16], sizes = [4, 112], strides = [1, 1]} : vector<4x128xf32> to vector<4x112xf32>
    %cst_36 = arith.constant 0.000000e+00 : f32
    %63 = vector.broadcast %cst_36 : f32 to vector<4x16xf32>
    %64 = tpu.concatenate %62, %63 in 1 : vector<4x112xf32>, vector<4x16xf32> -> vector<4x128xf32>
    %65 = arith.maximumf %61, %64 : vector<4x128xf32>
    %66 = arith.negf %65 : vector<4x128xf32>
    %67 = math.exp %66 : vector<4x128xf32>
    %cst_37 = arith.constant 1.000000e+00 : f32
    %68 = vector.broadcast %cst_37 : f32 to vector<4x128xf32>
    %69 = arith.addf %68, %67 : vector<4x128xf32>
    %70 = arith.divf %68, %69 : vector<4x128xf32>
    %c0_38 = arith.constant 0 : index
    %c0_39 = arith.constant 0 : index
    %c0_40 = arith.constant 0 : index
    %71 = vector.load %arg8[%c0_38, %c0_39, %c0_40] : memref<1x4x128xf32, #tpu.memory_space<vmem>>, vector<1x4x128xf32>
    %72 = vector.shape_cast %71 : vector<1x4x128xf32> to vector<4x128xf32>
    %73 = vector.shape_cast %70 : vector<4x128xf32> to vector<1x4x128xf32>
    tpu.vector_store %arg8[%c0_38, %c0_39, %c0_40], %73 {strides = array<i32>} : memref<1x4x128xf32, #tpu.memory_space<vmem>>, vector<1x4x128xf32>,
    return
  }
  func.func @transform_0(%arg0: i32) -> (i32, i32, i32) {
    %c0_i32 = arith.constant 0 : i32
    %c0_i32_0 = arith.constant 0 : i32
    %c0_i32_1 = arith.constant 0 : i32
    return %arg0, %c0_i32, %c0_i32_0 : i32, i32, i32
  }
  func.func @transform_1(%arg0: i32) -> (i32, i32) {
    %c0_i32 = arith.constant 0 : i32
    %c0_i32_0 = arith.constant 0 : i32
    %c0_i32_1 = arith.constant 0 : i32
    return %c0_i32, %c0_i32_0 : i32, i32
  }
  func.func @transform_2(%arg0: i32) -> (i32, i32) {
    %c0_i32 = arith.constant 0 : i32
    %c0_i32_0 = arith.constant 0 : i32
    %c0_i32_1 = arith.constant 0 : i32
    return %c0_i32, %c0_i32_0 : i32, i32
  }
  func.func @transform_3(%arg0: i32) -> (i32, i32, i32) {
    %c0_i32 = arith.constant 0 : i32
    %c0_i32_0 = arith.constant 0 : i32
    %c0_i32_1 = arith.constant 0 : i32
    %c0_i32_2 = arith.constant 0 : i32
    return %c0_i32, %c0_i32_0, %c0_i32_1 : i32, i32, i32
  }
  func.func @transform_4(%arg0: i32) -> (i32, i32) {
    %c0_i32 = arith.constant 0 : i32
    %c0_i32_0 = arith.constant 0 : i32
    %c0_i32_1 = arith.constant 0 : i32
    return %c0_i32, %c0_i32_0 : i32, i32
  }
  func.func @transform_5(%arg0: i32) -> (i32, i32, i32) {
    %c0_i32 = arith.constant 0 : i32
    %c0_i32_0 = arith.constant 0 : i32
    %c0_i32_1 = arith.constant 0 : i32
    %c0_i32_2 = arith.constant 0 : i32
    return %c0_i32, %c0_i32_0, %c0_i32_1 : i32, i32, i32
  }
  func.func @transform_6(%arg0: i32) -> (i32, i32) {
    %c0_i32 = arith.constant 0 : i32
    %c0_i32_0 = arith.constant 0 : i32
    %c0_i32_1 = arith.constant 0 : i32
    return %c0_i32, %c0_i32_0 : i32, i32
  }
  func.func @transform_7(%arg0: i32) -> (i32, i32, i32) {
    %c0_i32 = arith.constant 0 : i32
    %c0_i32_0 = arith.constant 0 : i32
    %c0_i32_1 = arith.constant 0 : i32
    return %arg0, %c0_i32, %c0_i32_0 : i32, i32, i32
  }
}

</mosaic_0001>

<bundles_post_ra>
// kernel: tile.13
= control target key start
LH: loop header
LB: loop body
LE: loop exit
PB: predicated region body
PF: predicated region fallthrough
CT: control target
= control target key end

     0   :  { %s28_s0 = inlined_call_operand.vmem [shape: f32[2], index: 0, kind: input, shape index: {}]   ;;  %s29_s1 = inlined_call_operand.vmem [shape: f32[16,2], index: 1, kind: output, shape index: {}]  }
   0x1   :  { %v4_v0 = vld [vmem:[%s28_s0] ss:$0 sm:$0xff] }
   0x2   :  { %5 = vst [vmem:[%s29_s1] sm:$0xff] %v4_v0  ;;  %8 = vst [vmem:[%s29_s1 + $0x8] sm:$0xff] %v4_v0 }

// kernel: tile.14
= control target key start
LH: loop header
LB: loop body
LE: loop exit
PB: predicated region body
PF: predicated region fallthrough
CT: control target
= control target key end

     0   :  { %s131_s10 = smov 30   ;;  %s132_s11 = smov 26   ;;  %vm3_vm0 = vcmask 15360   ;;  %vm9_vm1 = vcmask 261360   ;;  %vm15_vm2 = vcmask 244960   ;;  %vm21_vm3 = vcmask 228560   ;;  %s207_s0 = inlined_call_operand.vmem [shape: f32[16,2], index: 0, kind: input, shape index: {}]   ;;  %s208_s1 = inlined_call_operand.vmem [shape: f32[1,32], index: 1, kind: output, shape index: {}]  }
   0x1   :  { %v101_v0 = vld [vmem:[%s207_s0 + $0xf] sm:$0x1]   ;;  %v103_v1 = vld [vmem:[%s207_s0 + $0xd] sm:$0x1]   ;;  %v102_v2 = vld [vmem:[%s207_s0 + $0xe] sm:$0x1]  }
   0x2   :  { %7 = vrot.lane.b32.xlu0 %v101_v0, %s131_s10  ;;  %19 = vrot.lane.b32.xlu1 %v103_v1, %s132_s11  ;;  %v104_v3 = vld [vmem:[%s207_s0 + $0xc] sm:$0x1]   ;;  %s133_s16 = smov 28   ;;  %s134_s17 = smov 24   ;;  %v105_v4 = vld [vmem:[%s207_s0 + $0xb] sm:$0x1]  }
   0x3   :  { %v106_v5 = vld [vmem:[%s207_s0 + $0xa] sm:$0x1]   ;;  %v2_v6 = vld [vmem:[%s207_s0] sm:$0x1]   ;;  %s135_s24 = smov 22   ;;  %s136_s25 = smov 20  }
   0x4   :  { %4 = vst.msk [vmem:[#allocation0] sm:$0x1] %vm3_vm0, %v2_v6   ;;  %v107_v7 = vld [vmem:[%s207_s0 + $0x9] sm:$0x1]   ;;  %v108_v8 = vld [vmem:[%s207_s0 + $0x8] sm:$0x1]  }
   0x5   :  { %s137_s30 = smov 18   ;;  %s138_s2 = smov 16   ;;  %v109_v9 = vld [vmem:[%s207_s0 + $0x7] sm:$0x1]   ;;  %v110_v10 = vld [vmem:[%s207_s0 + $0x6] sm:$0x1]  }
   0x6   :  { %13 = vrot.lane.b32.xlu0 %v102_v2, %s133_s16  ;;  %25 = vrot.lane.b32.xlu1 %v104_v3, %s134_s17  ;;  %s139_s7 = smov 14   ;;  %s140_s8 = smov 12   ;;  %v111_v11 = vld [vmem:[%s207_s0 + $0x5] sm:$0x1]   ;;  %v112_v12 = vld [vmem:[%s207_s0 + $0x4] sm:$0x1]  }
   0x7   :  { %s141_s13 = smov 10   ;;  %s142_s14 = smov 8   ;;  %v113_v13 = vld [vmem:[%s207_s0 + $0x3] sm:$0x1]   ;;  %v114_v14 = vld [vmem:[%s207_s0 + $0x2] sm:$0x1]  }
   0x8   :  { %s143_s19 = smov 6   ;;  %s144_s20 = smov 4   ;;  %v115_v15 = vld [vmem:[%s207_s0 + $0x1] sm:$0x1]   ;;  %vm27_vm4 = vcmask 212160   ;;  %vm33_vm5 = vcmask 195760  }
   0x9   :  { %s145_s0 = smov 2   ;;  %vm39_vm6 = vcmask 179360   ;;  %vm45_vm7 = vcmask 162960   ;;  %vm51_vm8 = vcmask 146560   ;;  %vm57_vm9 = vcmask 130160  }
   0xa   :  { %31 = vrot.lane.b32.xlu0 %v105_v4, %s135_s24  ;;  %37 = vrot.lane.b32.xlu1 %v106_v5, %s136_s25  ;;  %vm63_vm10 = vcmask 113760   ;;  %vm69_vm11 = vcmask 97360   ;;  %vm75_vm12 = vcmask 80960   ;;  %vm81_vm13 = vcmask 64560  }
   0xb   :  { %vm87_vm14 = vcmask 48160   ;;  %vm93_vm15 = vcmask 31760  }
   0xe   :  { %43 = vrot.lane.b32.xlu0 %v107_v7, %s137_s30  ;;  %49 = vrot.lane.b32.xlu1 %v108_v8, %s138_s2 }
  0x12   :  { %55 = vrot.lane.b32.xlu0 %v109_v9, %s139_s7  ;;  %61 = vrot.lane.b32.xlu1 %v110_v10, %s140_s8 }
  0x16   :  { %67 = vrot.lane.b32.xlu0 %v111_v11, %s141_s13  ;;  %73 = vrot.lane.b32.xlu1 %v112_v12, %s142_s14 }
  0x1a   :  { %79 = vrot.lane.b32.xlu0 %v113_v13, %s143_s19  ;;  %85 = vrot.lane.b32.xlu1 %v114_v14, %s144_s20 }
  0x1e   :  { %91 = vrot.lane.b32.xlu0 %v115_v15, %s145_s0 }
  0x74   :  { %v8_v16 = vpop.permute.xlu0 %7   ;;  %v20_v17 = vpop.permute.xlu1 %19  }
  0x75   :  { %10 = vst.msk [vmem:[#allocation0] sm:$0x1] %vm9_vm1, %v8_v16  }
  0x78   :  { %v14_v18 = vpop.permute.xlu0 %13   ;;  %v26_v19 = vpop.permute.xlu1 %25  }
  0x79   :  { %16 = vst.msk [vmem:[#allocation0] sm:$0x1] %vm15_vm2, %v14_v18  }
  0x7a   :  { %22 = vst.msk [vmem:[#allocation0] sm:$0x1] %vm21_vm3, %v20_v17  }
  0x7b   :  { %28 = vst.msk [vmem:[#allocation0] sm:$0x1] %vm27_vm4, %v26_v19  }
  0x7c   :  { %v32_v20 = vpop.permute.xlu0 %31   ;;  %v38_v21 = vpop.permute.xlu1 %37  }
  0x7d   :  { %34 = vst.msk [vmem:[#allocation0] sm:$0x1] %vm33_vm5, %v32_v20  }
  0x7e   :  { %40 = vst.msk [vmem:[#allocation0] sm:$0x1] %vm39_vm6, %v38_v21  }
  0x80   :  { %v44_v22 = vpop.permute.xlu0 %43   ;;  %v50_v23 = vpop.permute.xlu1 %49  }
  0x81   :  { %46 = vst.msk [vmem:[#allocation0] sm:$0x1] %vm45_vm7, %v44_v22  }
  0x82   :  { %52 = vst.msk [vmem:[#allocation0] sm:$0x1] %vm51_vm8, %v50_v23  }
  0x84   :  { %v56_v24 = vpop.permute.xlu0 %55   ;;  %v62_v25 = vpop.permute.xlu1 %61  }
  0x85   :  { %58 = vst.msk [vmem:[#allocation0] sm:$0x1] %vm57_vm9, %v56_v24  }
  0x86   :  { %64 = vst.msk [vmem:[#allocation0] sm:$0x1] %vm63_vm10, %v62_v25  }
  0x88   :  { %v68_v26 = vpop.permute.xlu0 %67   ;;  %v74_v27 = vpop.permute.xlu1 %73  }
  0x89   :  { %70 = vst.msk [vmem:[#allocation0] sm:$0x1] %vm69_vm11, %v68_v26  }
  0x8a   :  { %76 = vst.msk [vmem:[#allocation0] sm:$0x1] %vm75_vm12, %v74_v27  }
  0x8c   :  { %v80_v28 = vpop.permute.xlu0 %79   ;;  %v86_v29 = vpop.permute.xlu1 %85  }
  0x8d   :  { %82 = vst.msk [vmem:[#allocation0] sm:$0x1] %vm81_vm13, %v80_v28  }
  0x8e   :  { %88 = vst.msk [vmem:[#allocation0] sm:$0x1] %vm87_vm14, %v86_v29  }
  0x90   :  { %v92_v30 = vpop.permute.xlu0 %91  }
  0x91   :  { %94 = vst.msk [vmem:[#allocation0] sm:$0x1] %vm93_vm15, %v92_v30  }
  0x98   :  { %v98_v31 = vld [vmem:[#allocation0] sm:$0x1] }
  0x99   :  { %100 = vst [vmem:[%s208_s1] sm:$0x1] %v98_v31 }

// kernel: downsample_conv_forward.1
= control target key start
LH: loop header
LB: loop body
LE: loop exit
PB: predicated region body
PF: predicated region fallthrough
CT: control target
= control target key end

     0   :  { %12 = vsyncpa [#allocation3], 0  ;;  %s1460_s24 = smov 0   ;;  %s1612_s0 = inlined_call_operand.vmem [shape: f32[2,16,32], index: 0, kind: input, shape index: {}]   ;;  %s1613_s1 = inlined_call_operand.vmem [shape: f32[1,32], index: 1, kind: input, shape index: {}]   ;;  %s1614_s2 = inlined_call_operand.vmem [shape: f32[1,32], index: 2, kind: input, shape index: {}]   ;;  %s1615_s3 = inlined_call_operand.vmem [shape: f32[3,32,128], index: 3, kind: input, shape index: {}]   ;;  %s1616_s4 = inlined_call_operand.vmem [shape: f32[1,128], index: 4, kind: input, shape index: {}]   ;;  %s1617_s5 = inlined_call_operand.hbm [shape: f32[3,128,128], index: 5, kind: input, shape index: {}]   ;;  %s1618_s6 = inlined_call_operand.vmem [shape: f32[1,128], index: 6, kind: input, shape index: {}]   ;;  %s1619_s7 = inlined_call_operand.vmem [shape: f32[2,4,128], index: 7, kind: output, shape index: {}]  }
   0x1 LB: > { %s1466_s25 = sadd.s32 4294967295, %s1409_s24   ;;  %p1000_p0 = scmp.ge.s32.totalorder %s1409_s24, 1  ;;  %s1409_s24 = sphi %s1460_s24, %s18_s24  }
   0x2   : > { %p201_p1 = scmp.lt.s32.totalorder %s1409_s24, 3  ;;  %s1411_s26 = smov [#allocation2]  }
   0x3   : > { %s225_s27 = sshll.u32 %s1411_s26, 4  ;;  %p1620_p3 = scmp.eq.s32.totalorder %s1466_s25, 0  ;;  %s226_s27 = int_to_ptr.vmem [resolvable:$true] %s225_s27 }
   0x4   : > { %p1470_p2 = pnand %p1000_p0, %p201_p1  ;;  %s1371_s9 = scalar_lea.hbm %s1617_s5, 6144 }
   0x5   : > { %p1372_p6 = scmp.ne.s32.totalorder %s1617_s5, %s1371_s9  ;;  %p1378_p10 = scmp.lt.u32.totalorder %s1371_s9, %s1617_s5 }
   0x6   : > { %s1622_s28 = scalar_select %p1470_p2, 1, 0 }
   0x7   : > { %p1344_p4 = pneg %p1470_p2 }
   0x9   : > { %p1479_p5 = pnand %p1620_p3, %p1344_p4 }
   0xb   : > { %p1373_p7 = pneg %p1479_p5 }
   0xd   : > { %p1374_p8 = pnand %p1373_p7, %p1372_p6 }
   0xf   : > { %p1375_p9 = pneg %p1374_p8 }
  0x11   : > { %p1380_p11 = pnand %p1378_p10, %p1375_p9 }
  0x13   : > { %1383 = shalt.err (!%p1380_p11)
}
  0x14   : > { %s1384_s14 = scalar_lea.vmem %s226_s27, 6144  ;;  %p1392_p1 = scmp.lt.s32.totalorder %s226_s27, %s226_s27 }
  0x15   : > { %p1385_p12 = scmp.ne.s32.totalorder %s226_s27, %s1384_s14  ;;  %p1393_p4 = scmp.lt.s32.totalorder %s1384_s14, %s1384_s14 }
  0x17   : > { %p1387_p13 = pnand %p1385_p12, %p1373_p7  ;;  %p1394_p3 = por %p1393_p4, %p1392_p1 }
  0x19   : > { %p1388_p0 = pneg %p1387_p13 }
  0x1b   : > { %p1395_p2 = pnand %p1394_p3, %p1388_p0 }
  0x1d   : > { %1398 = shalt.err (!%p1395_p2)
}
  0x1e   : > { %s1412_s15 = smov 128   ;;  %s1413_s16 = smov 8  }
  0x1f   : > { %1347 = dma.hbm_to_vmem [thread:$0]  (!%p1479_p5), %s1617_s5, 6144, %s226_s27, [#allocation3], %s1412_s15, %s1412_s15, %s1413_s16  }
  0x20   : > { %p1624_p6 = scmp.ne.s32.totalorder %s1622_s28, 0 }
  0x21   : > { %p1625_p8 = scmp.eq.s32.totalorder (!%p1624_p6), %s1466_s25, 0 }
  0x22   : > { %252 = sbr.rel (%p1624_p6) target bundleno = 817 (0x331), region = 48 }
  0x29   : > { %1404 = dma.done.wait (%p1625_p8), [#allocation3], 6144   ;;  %p1626_p7 = pmov %p1625_p8 }
  0x2a   : > { %p283_p2 = scmp.lt.s32.totalorder %s1466_s25, 1  ;;  %v1010_v0 = vld [vmem:[%s1615_s3 + $0x20] sm:$0xff]  ;;  %v1011_v1 = vld [vmem:[%s1615_s3 + $0x28] sm:$0xff]  ;;  %v1012_v2 = vld [vmem:[%s1615_s3 + $0x30] sm:$0xff]  ;;  %vm335_vm0 = vcmask 261120   ;;  %vm314_vm1 = vcmask 1040384  }
  0x2b   : > { %1406 = vsyncadd (%p1626_p7), [#allocation3], 4294961152  ;;  %v1240_v3 = vpack.c.bf16 %v1011_v1, %v1010_v0  ;;  %v1013_v4 = vld [vmem:[%s1615_s3 + $0x38] sm:$0xff]  ;;  %v1008_v8 = vld [vmem:[%s1613_s1] ss:$0 sm:$0xff]  ;;  %vm320_vm2 = vcmask 1046528  }
  0x2c   : > { %s1628_s25 = smov (!%p283_p2, %s1466_s25), 1  ;;  %v1244_v7 = vpack.c.bf16 %v1013_v4, %v1012_v2  ;;  %v1009_v9 = vld [vmem:[%s1614_s2] ss:$0 sm:$0xff]  ;;  %v327_v13 = vld [vmem:[%s1615_s3 + $0x8] sm:$0xff]  ;;  %v328_v16 = vld [vmem:[%s1615_s3 + $0x10] sm:$0xff]  ;;  %v1414_v37 = vmov 0.0|0.0  }
  0x2d   : > { %s1032_s19 = sshll.u32 %s1628_s25, 4  ;;  %v326_v10 = vld [vmem:[%s1615_s3] sm:$0xff]  ;;  %1241 = vmatprep.subr.bf16.mxu0 %v1240_v3  ;;  %v329_v17 = vld [vmem:[%s1615_s3 + $0x18] sm:$0xff]  ;;  %v1019_v23 = vld [vmem:[%s1615_s3 + $0x48] sm:$0xff]  ;;  %1264 = vmatprep.subr.bf16.mxu1 %v1414_v37  ;;  %vm1416_vm3 = vmmov 0   ;;  %s1418_s11 = smov 120  }
  0x2e   : > { %s287_s22 = scalar_lea.vmem %s1612_s0, %s1032_s19  ;;  %1243 = vmatpush3.bf16.msra.mxu0 %v1240_v3  ;;  %v1248_v15 = vpack.c.bf16 %v327_v13, %v326_v10  ;;  %v1252_v20 = vpack.c.bf16 %v329_v17, %v328_v16  ;;  %v1018_v22 = vld [vmem:[%s1615_s3 + $0x40] sm:$0xff]  ;;  %v1020_v28 = vld [vmem:[%s1615_s3 + $0x50] sm:$0xff]  ;;  %v1021_v29 = vld [vmem:[%s1615_s3 + $0x58] sm:$0xff]  ;;  %v1415_v10 = vmov 1966171168   ;;  %vm621_vm4 = vcmask 982016  }
  0x2f   : > { %v292_v5 = vld [vmem:[%s287_s22] sm:$0xff]  ;;  %v293_v6 = vld [vmem:[%s287_s22 + $0x8] sm:$0xff]  ;;  %1245 = vmatprep.subr.bf16.mxu0 %v1244_v7  ;;  %v1256_v25 = vpack.c.bf16 %v1019_v23, %v1018_v22  ;;  %v1260_v31 = vpack.c.bf16 %v1021_v29, %v1020_v28  ;;  %v656_v40 = vld [vmem:[#allocation2 + $0x90] sm:$0xff]  ;;  %s1419_s14 = smov 112   ;;  %vm923_vm6 = vcmask 916480   ;;  %s1007_s15 = sshll.u32 %s1628_s25, 2 }
  0x30   : > { %v301_v11 = vmul.f32 %v1008_v8, %v292_v5  ;;  %v302_v12 = vmul.f32 %v1008_v8, %v293_v6  ;;  %v654_v34 = vld [vmem:[#allocation2 + $0x80] sm:$0xff]  ;;  %v655_v35 = vld [vmem:[#allocation2 + $0x88] sm:$0xff]  ;;  %v657_v41 = vld [vmem:[#allocation2 + $0x98] sm:$0xff]  ;;  %s291_s18 = scalar_lea.vmem %s1619_s7, %s1007_s15 }
  0x31   : > { %v637_v36 = vld [vmem:[#allocation2] sm:$0xff]  ;;  %v1265_v38 = vpack.c.bf16 %v655_v35, %v654_v34  ;;  %v638_v39 = vld [vmem:[#allocation2 + $0x8] sm:$0xff]  ;;  %v639_v43 = vld [vmem:[#allocation2 + $0x10] sm:$0xff]  ;;  %v1268_v45 = vpack.c.bf16 %v657_v41, %v656_v40  ;;  %v1417_v35 = vmov 0.0  }
  0x32   : > { %v310_v14 = vadd.f32 %v1009_v9, %v301_v11  ;;  %v311_v18 = vadd.f32 %v1009_v9, %v302_v12  ;;  %1247 = vmatpush3.bf16.msra.mxu0 %v1244_v7  ;;  %v1289_v42 = vpack.c.bf16 %v638_v39, %v637_v36  ;;  %v640_v44 = vld [vmem:[#allocation2 + $0x18] sm:$0xff]  ;;  %v658_v47 = vld [vmem:[#allocation2 + $0xa0] sm:$0xff]  ;;  %v659_v48 = vld [vmem:[#allocation2 + $0xa8] sm:$0xff]  ;;  %v594_v11 = vunpack.c.l.s4 %v1415_v10  ;;  %1167 = vmatprep.mubr.msk.f32.mxu1 %vm1416_vm3, %v1417_v35 }
  0x33   : > { %1249 = vmatprep.subr.bf16.mxu0 %v1248_v15  ;;  %1266 = vmatpush3.bf16.msra.mxu1 %v1265_v38  ;;  %v1292_v46 = vpack.c.bf16 %v640_v44, %v639_v43  ;;  %v641_v49 = vld [vmem:[#allocation2 + $0x20] sm:$0xff]  ;;  %v642_v50 = vld [vmem:[#allocation2 + $0x28] sm:$0xff]  ;;  %v1271_v51 = vpack.c.bf16 %v659_v48, %v658_v47  ;;  %v660_v53 = vld [vmem:[#allocation2 + $0xb0] sm:$0xff]  ;;  %v596_v12 = vlaneseq }
  0x34   : > { %1110 = vmatprep.mubr.msk.f32.mxu0 %vm335_vm0, %v310_v14  ;;  %v315_v19 = vrot.slane %v310_v14, 7  ;;  %v316_v24 = vrot.slane %v311_v18, 7  ;;  %v321_v26 = vrot.slane %v310_v14, 1  ;;  %v322_v27 = vrot.slane %v311_v18, 1  ;;  %1267 = vmatprep.subr.bf16.mxu1 %v1414_v37  ;;  %v661_v54 = vld [vmem:[#allocation2 + $0xb8] sm:$0xff]  ;;  %v643_v55 = vld [vmem:[#allocation2 + $0x30] sm:$0xff]  ;;  %vm1025_vm5 = vmneg %vm314_vm1 }
  0x35   : > { %1111 = vmatmul.mubr.msk.f32.vlgmr.msra.gmra.mrb[0].mxu0 %vm335_vm0, %v311_v18  ;;  %v1295_v52 = vpack.c.bf16 %v642_v50, %v641_v49  ;;  %v644_v56 = vld [vmem:[#allocation2 + $0x38] sm:$0xff]  ;;  %v1274_v57 = vpack.c.bf16 %v661_v54, %v660_v53  ;;  %v662_v59 = vld [vmem:[#allocation2 + $0xc0] sm:$0xff]  ;;  %v663_v60 = vld [vmem:[#allocation2 + $0xc8] sm:$0xff]  ;;  %v595_v13 = vunpack.c.0.s8 %v594_v11  ;;  %v597_v14 = vshrl.u32 %v596_v12, 7 }
  0x36   : > { %v319_v21 = vsel %vm314_vm1, 0.0, %v315_v19  ;;  %1251 = vmatpush3.bf16.msra.mxu0 %v1248_v15  ;;  %v317_v30 = vsel %vm314_vm1, %v315_v19, %v316_v24  ;;  %v323_v32 = vsel %vm320_vm2, %v321_v26, %v322_v27  ;;  %v325_v33 = vsel %vm320_vm2, %v322_v27, 0.0  ;;  %v645_v61 = vld [vmem:[#allocation2 + $0x40] sm:$0xff]  ;;  %v646_v62 = vld [vmem:[#allocation2 + $0x48] sm:$0xff]  ;;  %v664_v1 = vld [vmem:[#allocation2 + $0xd0] sm:$0xff] }
  0x37   : > { %1121 = vmatprep.mubr.msk.f32.mxu0 %vm335_vm0, %v319_v21  ;;  %1253 = vmatprep.subr.bf16.mxu0 %v1252_v20  ;;  %v1298_v58 = vpack.c.bf16 %v644_v56, %v643_v55  ;;  %v1277_v63 = vpack.c.bf16 %v663_v60, %v662_v59  ;;  %v1301_v0 = vpack.c.bf16 %v646_v62, %v645_v61  ;;  %v665_v2 = vld [vmem:[#allocation2 + $0xd8] sm:$0xff]  ;;  %v647_v3 = vld [vmem:[#allocation2 + $0x50] sm:$0xff]  ;;  %v666_v7 = vld [vmem:[#allocation2 + $0xe0] sm:$0xff] }
  0x38   : > { %1269 = vmatpush3.bf16.msra.mxu1 %v1268_v45  ;;  %v648_v4 = vld [vmem:[#allocation2 + $0x58] sm:$0xff]  ;;  %v1280_v5 = vpack.c.bf16 %v665_v2, %v664_v1  ;;  %v667_v8 = vld [vmem:[#allocation2 + $0xe8] sm:$0xff]  ;;  %v1024_v15 = vld [vmem:[%s1616_s4] ss:$0 sm:$0xff] }
  0x39   : > { %1270 = vmatprep.subr.bf16.mxu1 %v1414_v37  ;;  %v1304_v6 = vpack.c.bf16 %v648_v4, %v647_v3  ;;  %v1283_v9 = vpack.c.bf16 %v667_v8, %v666_v7  ;;  %v649_v17 = vld [vmem:[#allocation2 + $0x60] sm:$0xff]  ;;  %v650_v18 = vld [vmem:[#allocation2 + $0x68] sm:$0xff]  ;;  %v668_v23 = vld [vmem:[#allocation2 + $0xf0] sm:$0xff] }
  0x3a   : > { %1255 = vmatpush3.bf16.msra.mxu0 %v1252_v20  ;;  %v1583_v20 = vsub.s32 %v595_v13, %v597_v14  ;;  %v1307_v22 = vpack.c.bf16 %v650_v18, %v649_v17  ;;  %v669_v24 = vld [vmem:[#allocation2 + $0xf8] sm:$0xff]  ;;  %v651_v29 = vld [vmem:[#allocation2 + $0x70] sm:$0xff]  ;;  %v812_v44 = vld [vmem:[#allocation2 + $0x100] sm:$0xff] }
  0x3b   : > { %1257 = vmatprep.subr.bf16.mxu0 %v1256_v25  ;;  %v1286_v26 = vpack.c.bf16 %v669_v24, %v668_v23  ;;  %v813_v45 = vld [vmem:[#allocation2 + $0x108] sm:$0xff]  ;;  %v814_v50 = vld [vmem:[#allocation2 + $0x110] sm:$0xff]  ;;  %v816_v54 = vld [vmem:[#allocation2 + $0x120] sm:$0xff] }
  0x3c   : > { %1272 = vmatpush3.bf16.msra.mxu1 %v1271_v51  ;;  %v1313_v48 = vpack.c.bf16 %v813_v45, %v812_v44  ;;  %v815_v51 = vld [vmem:[#allocation2 + $0x118] sm:$0xff]  ;;  %v817_v55 = vld [vmem:[#allocation2 + $0x128] sm:$0xff]  ;;  %v820_v60 = vld [vmem:[#allocation2 + $0x140] sm:$0xff] }
  0x3d   : > { %1122 = vmatmul.mubr.msk.f32.vlgmr.msra.gmra.mrb[0].mxu0 %vm335_vm0, %v317_v30  ;;  %1273 = vmatprep.subr.bf16.mxu1 %v1414_v37  ;;  %v652_v30 = vld [vmem:[#allocation2 + $0x78] sm:$0xff]  ;;  %v1316_v53 = vpack.c.bf16 %v815_v51, %v814_v50  ;;  %v1319_v56 = vpack.c.bf16 %v817_v55, %v816_v54  ;;  %v821_v61 = vld [vmem:[#allocation2 + $0x148] sm:$0xff]  ;;  %v824_v2 = vld [vmem:[#allocation2 + $0x160] sm:$0xff] }
  0x3e   : > { %1259 = vmatpush3.bf16.msra.mxu0 %v1256_v25  ;;  %1132 = vmatprep.mubr.msk.f32.mxu0 %vm335_vm0, %v323_v32  ;;  %v1310_v32 = vpack.c.bf16 %v652_v30, %v651_v29  ;;  %v1325_v62 = vpack.c.bf16 %v821_v61, %v820_v60  ;;  %v825_v3 = vld [vmem:[#allocation2 + $0x168] sm:$0xff] }
  0x3f   : > { %1261 = vmatprep.subr.bf16.mxu0 %v1260_v31  ;;  %v1331_v4 = vpack.c.bf16 %v825_v3, %v824_v2 }
  0x40   : > { %1275 = vmatpush3.bf16.msra.mxu1 %v1274_v57  ;;  %v818_v57 = vld [vmem:[#allocation2 + $0x130] sm:$0xff] }
  0x41   : > { %1276 = vmatprep.subr.bf16.mxu1 %v1414_v37 }
  0x42   : > { %1263 = vmatpush3.bf16.msra.mxu0 %v1260_v31 }
  0x43   : > { %1288 = vmatprep.subr.bf16.mxu0 %v1414_v37 }
  0x44   : > { %1278 = vmatpush3.bf16.msra.mxu1 %v1277_v63  ;;  %v822_v63 = vld [vmem:[#allocation2 + $0x150] sm:$0xff] }
  0x45   : > { %1133 = vmatmul.mubr.msk.f32.vlgmr.msra.gmra.mrb[0].mxu0 %vm335_vm0, %v325_v33  ;;  %1279 = vmatprep.subr.bf16.mxu1 %v1414_v37 }
  0x46   : > { %1290 = vmatpush3.bf16.msra.mxu0 %v1289_v42  ;;  %1202 = vmatprep.mubr.msk.f32.mxu0 %vm1416_vm3, %v1417_v35 }
  0x47   : > { %1291 = vmatprep.subr.bf16.mxu0 %v1414_v37 }
  0x48   : > { %1281 = vmatpush3.bf16.msra.mxu1 %v1280_v5  ;;  %v826_v5 = vld [vmem:[#allocation2 + $0x170] sm:$0xff] }
  0x49   : > { %1282 = vmatprep.subr.bf16.mxu1 %v1414_v37 }
  0x4a   : > { %1293 = vmatpush3.bf16.msra.mxu0 %v1292_v46 }
  0x4b   : > { %1294 = vmatprep.subr.bf16.mxu0 %v1414_v37 }
  0x4c   : > { %1284 = vmatpush3.bf16.msra.mxu1 %v1283_v9 }
  0x4d   : > { %1285 = vmatprep.subr.bf16.mxu1 %v1414_v37 }
  0x4e   : > { %1296 = vmatpush3.bf16.msra.mxu0 %v1295_v52 }
  0x4f   : > { %1297 = vmatprep.subr.bf16.mxu0 %v1414_v37 }
  0x50   : > { %1287 = vmatpush3.bf16.msra.mxu1 %v1286_v26 }
  0x51   : > { %1312 = vmatprep.subr.bf16.mxu1 %v1414_v37 }
  0x52   : > { %1299 = vmatpush3.bf16.msra.mxu0 %v1298_v58  ;;  %v819_v58 = vld [vmem:[#allocation2 + $0x138] sm:$0xff] }
  0x53   : > { %1300 = vmatprep.subr.bf16.mxu0 %v1414_v37  ;;  %v1322_v59 = vpack.c.bf16 %v819_v58, %v818_v57 }
  0x56   : > { %1302 = vmatpush3.bf16.msra.mxu0 %v1301_v0  ;;  %v823_v0 = vld [vmem:[#allocation2 + $0x158] sm:$0xff] }
  0x57   : > { %1303 = vmatprep.subr.bf16.mxu0 %v1414_v37  ;;  %v1328_v1 = vpack.c.bf16 %v823_v0, %v822_v63 }
  0x5a   : > { %1305 = vmatpush3.bf16.msra.mxu0 %v1304_v6  ;;  %v827_v6 = vld [vmem:[#allocation2 + $0x178] sm:$0xff] }
  0x5b   : > { %1306 = vmatprep.subr.bf16.mxu0 %v1414_v37  ;;  %v1334_v7 = vpack.c.bf16 %v827_v6, %v826_v5 }
  0x5e   : > { %1308 = vmatpush3.bf16.msra.mxu0 %v1307_v22 }
  0x5f   : > { %1309 = vmatprep.subr.bf16.mxu0 %v1414_v37 }
  0x62   : > { %1311 = vmatpush3.bf16.msra.mxu0 %v1310_v32 }
 0x118   : > { %v1134_v16 = vpop.f32.mrb[0].mxu0 }
 0x119   : > { %v590_v19 = vadd.f32 %v1134_v16, %v1024_v15  ;;  %v571_v21 = vpop.f32.mrb[1].mxu0 }
 0x11a   : > { %v589_v25 = vadd.f32 %v1024_v15, %v571_v21  ;;  %v1028_v15 = vld [vmem:[%s1618_s6] ss:$0 sm:$0xff] }
 0x11b   : > { %v592_v27 = vmax.f32 %v590_v19, 0.0 }
 0x11c   : > { %v591_v28 = vmax.f32 %v589_v25, 0.0 }
 0x11d   : > { %v606_v31 = vrot.slane %v592_v27, %v1583_v20 }
 0x11e   : > { %v599_v33 = vrot.slane %v591_v28, %v1583_v20 }
 0x11f   : > { %v610_v34 = vrot.slane %v606_v31, 4 }
 0x120   : > { %v609_v36 = vrot.slane %v599_v33, 4 }
 0x121   : > { %v614_v38 = vmax.f32 %v606_v31, %v610_v34 }
 0x122   : > { %v613_v39 = vmax.f32 %v599_v33, %v609_v36 }
 0x124   : > { %v617_v40 = vcombine.low %v613_v39, %v614_v38 }
 0x126   : > { %618 = vrot.lane.b32.xlu0 %v617_v40, %s1418_s11 }
 0x198   : > { %v619_v41 = vpop.permute.xlu0 %618 }
 0x199   : > { %v622_v42 = vsel %vm621_vm4, %v619_v41, 0.0 }
 0x19a   : > { %v624_v43 = vcombine.high %v622_v42, %v622_v42  ;;  %v626_v46 = vmax.f32 %v613_v39, %v622_v42 }
 0x19c   : > { %v627_v47 = vmax.f32 %v614_v38, %v624_v43 }
 0x19e   : > { %v630_v49 = vcombine.low %v626_v46, %v627_v47 }
 0x1a0   : > { %v631_v52 = vrot.slane %v630_v49, 7  ;;  %1168 = vmatmul.mubr.f32.vlgmr.msra.gmra.mrb[0].mxu1 %v630_v49  ;;  %v634_v8 = vrot.slane %v630_v49, 1 }
 0x1a1   : > { %1314 = vmatpush3.bf16.msra.mxu1 %v1313_v48  ;;  %1237 = vmatprep.mubr.msk.f32.mxu1 %vm1416_vm3, %v1417_v35 }
 0x1a2   : > { %1203 = vmatmul.mubr.msk.f32.vlgmr.msra.gmra.mrb[2].mxu0 %vm1025_vm5, %v631_v52  ;;  %1315 = vmatprep.subr.bf16.mxu1 %v1414_v37 }
 0x1a5   : > { %1317 = vmatpush3.bf16.msra.mxu1 %v1316_v53 }
 0x1a6   : > { %1318 = vmatprep.subr.bf16.mxu1 %v1414_v37 }
 0x1a9   : > { %1320 = vmatpush3.bf16.msra.mxu1 %v1319_v56 }
 0x1aa   : > { %1321 = vmatprep.subr.bf16.mxu1 %v1414_v37 }
 0x1ad   : > { %1323 = vmatpush3.bf16.msra.mxu1 %v1322_v59 }
 0x1ae   : > { %1324 = vmatprep.subr.bf16.mxu1 %v1414_v37 }
 0x1b1   : > { %1326 = vmatpush3.bf16.msra.mxu1 %v1325_v62 }
 0x1b2   : > { %1327 = vmatprep.subr.bf16.mxu1 %v1414_v37 }
 0x1b5   : > { %1329 = vmatpush3.bf16.msra.mxu1 %v1328_v1 }
 0x1b6   : > { %1330 = vmatprep.subr.bf16.mxu1 %v1414_v37 }
 0x1b9   : > { %1332 = vmatpush3.bf16.msra.mxu1 %v1331_v4 }
 0x1ba   : > { %1333 = vmatprep.subr.bf16.mxu1 %v1414_v37 }
 0x1bd   : > { %1335 = vmatpush3.bf16.msra.mxu1 %v1334_v7 }
 0x1c0   : > { %1238 = vmatmul.mubr.msk.f32.vlgmr.msra.gmra.mrb[2].mxu1 %vm320_vm2, %v634_v8 }
 0x273   : > { %v737_v9 = vpop.f32.mrb[0].mxu1 }
 0x274   : > { %v1169_v10 = vpop.f32.mrb[1].mxu1 }
 0x275   : > { %v807_v11 = vpop.f32.mrb[2].mxu0 }
 0x276   : > { %v808_v12 = vadd.f32 %v807_v11, %v737_v9  ;;  %v1204_v13 = vpop.f32.mrb[3].mxu0 }
 0x293   : > { %v894_v14 = vpop.f32.mrb[2].mxu1 }
 0x294   : > { %v898_v16 = vadd.f32 %v894_v14, %v808_v12  ;;  %v1239_v17 = vpop.f32.mrb[3].mxu1 }
 0x296   : > { %v906_v18 = vadd.f32 %v1028_v15, %v898_v16 }
 0x298   : > { %v907_v19 = vmax.f32 %v906_v18, 0.0 }
 0x29a   : > { %v914_v37 = vrot.slane %v907_v19, %v1583_v20 }
 0x29c   : > { %v916_v21 = vrot.slane %v914_v37, 4 }
 0x29e   : > { %v918_v22 = vmax.f32 %v914_v37, %v916_v21 }
 0x2a0   : > { %920 = vrot.lane.b32.xlu0 %v918_v22, %s1419_s14 }
 0x312   : > { %v921_v23 = vpop.permute.xlu0 %920 }
 0x313   : > { %v924_v24 = vsel %vm923_vm6, %v921_v23, 0.0 }
 0x314   : > { %v925_v25 = vmax.f32 %v918_v22, %v924_v24 }
 0x316   : > { %v1029_v26 = vmul.f32 -1.442695, %v925_v25 }
 0x318   : > { %1367 = vpow2.f32 %v1029_v26 }
 0x322   : > { %v1368_v27 = vpop.eup %1367 }
 0x323   : > { %v929_v28 = vadd.f32 1.0, %v1368_v27 }
 0x325   : > { %1369 = vrcp.f32 %v929_v28 }
 0x32f   : > { %v1370_v29 = vpop.eup %1369 }
 0x330   : > { %932 = vst [vmem:[%s291_s18] sm:$0xf] %v1370_v29 }
 0x331 PF: > { %s18_s24 = sadd.s32 1, %s1409_s24  }
 0x332   : > { %p15_p3 = scmp.ge.s32.totalorder %s18_s24, 4  }
 0x334   :  { %17 = sbr.rel (!%p15_p3) target bundleno = 1 (0x1), region = 87 }
 0x33b   :  { %952 = vsyncpa [#allocation3], 1 }
 0x33c   :  { %954 = vsyncpa [#allocation3 + $0x1], 1 }

</bundles_post_ra>
